<compile_context>
chip_gen: v6e
topology: v6e:2x2x1
jax: 0.10.0
libtpu: 0.0.40
codegen_flags: <defaults>
</compile_context>

<pallas_src>
import functools

import jax
import jax.numpy as jnp
from jax.experimental import pallas as pl
from jax.experimental.pallas import tpu as pltpu


def conv_tanh_kernel(x_ref, w_ref, b_ref, o_ref, *, taps, cin, tile_m, win):
    """Fused 3x3 conv (9 shifted K=cin matmuls) + bias + tanh.

    x_ref: (M_in, Cin)        flattened (padded) NHWC input, resident block
    w_ref: (KH*KW*Cin, Cout)  tap-major flattened conv weights, resident block
    b_ref: (1, Cout)          bias, resident block
    o_ref: (tile_m, Cout)     output tile (rows = flat N*H*W positions)
    """
    base = pl.multiple_of(pl.program_id(0) * tile_m, tile_m)
    # One aligned dynamic load of all rows this output tile needs.
    x_win = x_ref[pl.ds(base, win), :]                  # (tile_m + pad, Cin)

    cout = o_ref.shape[-1]
    acc = jnp.zeros((tile_m, cout), dtype=jnp.float32)
    for t, s in enumerate(taps):                        # statically unrolled
        lhs = x_win[s:s + tile_m, :]                    # static shifted view
        rhs = w_ref[t * cin:(t + 1) * cin, :]           # (Cin, Cout) tap weights
        acc = acc + jnp.dot(lhs, rhs, preferred_element_type=jnp.float32)

    o_ref[...] = jnp.tanh(acc + b_ref[...])


def model_tanh_forward(x_nchw, weight, bias, *, tile_m=64):
    """x_nchw: (N, Cin, H, W); weight: (Cout, Cin, KH, KW); bias: (Cout,)."""
    N, Cin, H, W = x_nchw.shape
    Cout, Cin_w, KH, KW = weight.shape
    assert Cin_w == Cin
    OH, OW = H - KH + 1, W - KW + 1

    M = N * H * W                                   # flat full-grid rows
    tile_m = max(8, (min(tile_m, M) + 7) // 8 * 8)  # multiple of 8
    grid_m = pl.cdiv(M, tile_m)
    m_out = grid_m * tile_m                         # padded output rows
    s_max = (KH - 1) * W + (KW - 1)                 # largest flat tap shift
    s_pad = (s_max + 7) // 8 * 8
    win = tile_m + s_pad                            # rows loaded per tile
    m_in = m_out + s_pad                            # padded input rows

    # ---- glue (fuses into one copy each way under jit) ----
    x_flat = jnp.transpose(x_nchw, (0, 2, 3, 1)).reshape(M, Cin)
    x_pad = jnp.pad(x_flat, ((0, m_in - M), (0, 0)))
    w_mat = jnp.transpose(weight, (2, 3, 1, 0)).reshape(KH * KW * Cin, Cout)
    b_mat = bias.reshape(1, Cout).astype(jnp.float32)

    taps = tuple(i * W + j for i in range(KH) for j in range(KW))
    kernel = functools.partial(conv_tanh_kernel, taps=taps, cin=Cin,
                               tile_m=tile_m, win=win)

    out_flat = pl.pallas_call(
        kernel,
        out_shape=jax.ShapeDtypeStruct((m_out, Cout), jnp.float32),
        grid_spec=pltpu.PrefetchScalarGridSpec(
            num_scalar_prefetch=0,
            grid=(grid_m,),
            in_specs=[
                pl.BlockSpec((m_in, Cin), lambda i: (0, 0)),            # resident
                pl.BlockSpec((KH * KW * Cin, Cout), lambda i: (0, 0)),  # resident
                pl.BlockSpec((1, Cout), lambda i: (0, 0)),              # resident
            ],
            out_specs=pl.BlockSpec((tile_m, Cout), lambda i: (i, 0)),
        ),
        compiler_params=pltpu.CompilerParams(
            dimension_semantics=("parallel",)),
    )(x_pad, w_mat, b_mat)

    # Drop padded / invalid-border rows and return NCHW.
    out_nhwc = out_flat[:M].reshape(N, H, W, Cout)[:, :OH, :OW, :]
    return jnp.transpose(out_nhwc, (0, 3, 1, 2))


if __name__ == "__main__":
    key = jax.random.PRNGKey(0)
    k_x, k_w, k_b = jax.random.split(key, 3)

    # Conv2d(16, 16, [3, 3], padding=[0, 0]) needs spatial dims >= 3;
    # use a small valid shape (2, 16, 8, 8) -> output (2, 16, 6, 6).
    N, CIN, H, W = 2, 16, 8, 8
    COUT, KH, KW = 16, 3, 3

    x = jax.random.normal(k_x, (N, CIN, H, W), dtype=jnp.float32)
    fan_in = CIN * KH * KW
    bound = 1.0 / (fan_in ** 0.5)
    weight = jax.random.uniform(k_w, (COUT, CIN, KH, KW),
                                dtype=jnp.float32, minval=-bound, maxval=bound)
    bias = jax.random.uniform(k_b, (COUT,), dtype=jnp.float32,
                              minval=-bound, maxval=bound)

    fwd = jax.jit(model_tanh_forward)
    out = fwd(x, weight, bias)
    jax.block_until_ready(out)

    # sanity check against XLA reference conv + tanh
    ref = jax.lax.conv_general_dilated(
        x, weight, window_strides=(1, 1), padding="VALID",
        dimension_numbers=("NCHW", "OIHW", "NCHW"))
    ref = jnp.tanh(ref + bias.reshape(1, COUT, 1, 1))
    assert out.shape == (N, COUT, H - KH + 1, W - KW + 1)
    assert jnp.allclose(out, ref, atol=2e-5, rtol=2e-5)

    print("KERNEL_OK")
</pallas_src>

<mosaic_0001>
module attributes {stable_mosaic.version = 11 : i64} {
  func.func @conv_tanh_kernel(%arg0: i32, %arg1: memref<152x16xf32, #tpu.memory_space<vmem>>, %arg2: memref<144x16xf32, #tpu.memory_space<vmem>>, %arg3: memref<1x16xf32, #tpu.memory_space<vmem>>, %arg4: memref<64x16xf32, #tpu.memory_space<vmem>>) attributes {dimension_semantics = [#tpu.dimension_semantics<parallel>], iteration_bounds = array<i64: 2>, scalar_prefetch = 0 : i64, scratch_operands = 0 : i64, tpu.core_type = #tpu.core_type<tc>, window_params = [{pipeline_mode = #tpu.pipeline_mode<synchronous>, transform_indices = @transform_0, window_bounds = array<i64: 152, 16>}, {pipeline_mode = #tpu.pipeline_mode<synchronous>, transform_indices = @transform_1, window_bounds = array<i64: 144, 16>}, {pipeline_mode = #tpu.pipeline_mode<synchronous>, transform_indices = @transform_2, window_bounds = array<i64: 1, 16>}, {transform_indices = @transform_3, window_bounds = array<i64: 64, 16>}]} {
    %c64_i32 = arith.constant 64 : i32
    %0 = arith.muli %arg0, %c64_i32 : i32
    %1 = tpu.assume_multiple %0, 64 : i32
    %2 = arith.index_cast %1 : i32 to index
    %c0 = arith.constant 0 : index
    %3 = vector.load %arg1[%2, %c0] : memref<152x16xf32, #tpu.memory_space<vmem>>, vector<88x16xf32>
    %cst = arith.constant 0.000000e+00 : f32
    %4 = vector.broadcast %cst : f32 to vector<64x16xf32>
    %5 = vector.extract_strided_slice %3 {offsets = [0, 0], sizes = [64, 16], strides = [1, 1]} : vector<88x16xf32> to vector<64x16xf32>
    %c0_0 = arith.constant 0 : index
    %c0_1 = arith.constant 0 : index
    %6 = vector.load %arg2[%c0_0, %c0_1] : memref<144x16xf32, #tpu.memory_space<vmem>>, vector<16x16xf32>
    %cst_2 = arith.constant dense<0.000000e+00> : vector<64x16xf32>
    %7 = tpu.matmul %5, %6, %cst_2 {dimension_numbers = #tpu.dot_dimension_numbers<[1], [0], [0], [1], [0, 0, 1, 1], [], []>} : vector<64x16xf32>, vector<16x16xf32>, vector<64x16xf32> -> vector<64x16xf32>
    %8 = arith.addf %4, %7 : vector<64x16xf32>
    %9 = vector.extract_strided_slice %3 {offsets = [1, 0], sizes = [64, 16], strides = [1, 1]} : vector<88x16xf32> to vector<64x16xf32>
    %c16 = arith.constant 16 : index
    %c0_3 = arith.constant 0 : index
    %10 = vector.load %arg2[%c16, %c0_3] : memref<144x16xf32, #tpu.memory_space<vmem>>, vector<16x16xf32>
    %cst_4 = arith.constant dense<0.000000e+00> : vector<64x16xf32>
    %11 = tpu.matmul %9, %10, %cst_4 {dimension_numbers = #tpu.dot_dimension_numbers<[1], [0], [0], [1], [0, 0, 1, 1], [], []>} : vector<64x16xf32>, vector<16x16xf32>, vector<64x16xf32> -> vector<64x16xf32>
    %12 = arith.addf %8, %11 : vector<64x16xf32>
    %13 = vector.extract_strided_slice %3 {offsets = [2, 0], sizes = [64, 16], strides = [1, 1]} : vector<88x16xf32> to vector<64x16xf32>
    %c32 = arith.constant 32 : index
    %c0_5 = arith.constant 0 : index
    %14 = vector.load %arg2[%c32, %c0_5] : memref<144x16xf32, #tpu.memory_space<vmem>>, vector<16x16xf32>
    %cst_6 = arith.constant dense<0.000000e+00> : vector<64x16xf32>
    %15 = tpu.matmul %13, %14, %cst_6 {dimension_numbers = #tpu.dot_dimension_numbers<[1], [0], [0], [1], [0, 0, 1, 1], [], []>} : vector<64x16xf32>, vector<16x16xf32>, vector<64x16xf32> -> vector<64x16xf32>
    %16 = arith.addf %12, %15 : vector<64x16xf32>
    %17 = vector.extract_strided_slice %3 {offsets = [8, 0], sizes = [64, 16], strides = [1, 1]} : vector<88x16xf32> to vector<64x16xf32>
    %c48 = arith.constant 48 : index
    %c0_7 = arith.constant 0 : index
    %18 = vector.load %arg2[%c48, %c0_7] : memref<144x16xf32, #tpu.memory_space<vmem>>, vector<16x16xf32>
    %cst_8 = arith.constant dense<0.000000e+00> : vector<64x16xf32>
    %19 = tpu.matmul %17, %18, %cst_8 {dimension_numbers = #tpu.dot_dimension_numbers<[1], [0], [0], [1], [0, 0, 1, 1], [], []>} : vector<64x16xf32>, vector<16x16xf32>, vector<64x16xf32> -> vector<64x16xf32>
    %20 = arith.addf %16, %19 : vector<64x16xf32>
    %21 = vector.extract_strided_slice %3 {offsets = [9, 0], sizes = [64, 16], strides = [1, 1]} : vector<88x16xf32> to vector<64x16xf32>
    %c64 = arith.constant 64 : index
    %c0_9 = arith.constant 0 : index
    %22 = vector.load %arg2[%c64, %c0_9] : memref<144x16xf32, #tpu.memory_space<vmem>>, vector<16x16xf32>
    %cst_10 = arith.constant dense<0.000000e+00> : vector<64x16xf32>
    %23 = tpu.matmul %21, %22, %cst_10 {dimension_numbers = #tpu.dot_dimension_numbers<[1], [0], [0], [1], [0, 0, 1, 1], [], []>} : vector<64x16xf32>, vector<16x16xf32>, vector<64x16xf32> -> vector<64x16xf32>
    %24 = arith.addf %20, %23 : vector<64x16xf32>
    %25 = vector.extract_strided_slice %3 {offsets = [10, 0], sizes = [64, 16], strides = [1, 1]} : vector<88x16xf32> to vector<64x16xf32>
    %c80 = arith.constant 80 : index
    %c0_11 = arith.constant 0 : index
    %26 = vector.load %arg2[%c80, %c0_11] : memref<144x16xf32, #tpu.memory_space<vmem>>, vector<16x16xf32>
    %cst_12 = arith.constant dense<0.000000e+00> : vector<64x16xf32>
    %27 = tpu.matmul %25, %26, %cst_12 {dimension_numbers = #tpu.dot_dimension_numbers<[1], [0], [0], [1], [0, 0, 1, 1], [], []>} : vector<64x16xf32>, vector<16x16xf32>, vector<64x16xf32> -> vector<64x16xf32>
    %28 = arith.addf %24, %27 : vector<64x16xf32>
    %29 = vector.extract_strided_slice %3 {offsets = [16, 0], sizes = [64, 16], strides = [1, 1]} : vector<88x16xf32> to vector<64x16xf32>
    %c96 = arith.constant 96 : index
    %c0_13 = arith.constant 0 : index
    %30 = vector.load %arg2[%c96, %c0_13] : memref<144x16xf32, #tpu.memory_space<vmem>>, vector<16x16xf32>
    %cst_14 = arith.constant dense<0.000000e+00> : vector<64x16xf32>
    %31 = tpu.matmul %29, %30, %cst_14 {dimension_numbers = #tpu.dot_dimension_numbers<[1], [0], [0], [1], [0, 0, 1, 1], [], []>} : vector<64x16xf32>, vector<16x16xf32>, vector<64x16xf32> -> vector<64x16xf32>
    %32 = arith.addf %28, %31 : vector<64x16xf32>
    %33 = vector.extract_strided_slice %3 {offsets = [17, 0], sizes = [64, 16], strides = [1, 1]} : vector<88x16xf32> to vector<64x16xf32>
    %c112 = arith.constant 112 : index
    %c0_15 = arith.constant 0 : index
    %34 = vector.load %arg2[%c112, %c0_15] : memref<144x16xf32, #tpu.memory_space<vmem>>, vector<16x16xf32>
    %cst_16 = arith.constant dense<0.000000e+00> : vector<64x16xf32>
    %35 = tpu.matmul %33, %34, %cst_16 {dimension_numbers = #tpu.dot_dimension_numbers<[1], [0], [0], [1], [0, 0, 1, 1], [], []>} : vector<64x16xf32>, vector<16x16xf32>, vector<64x16xf32> -> vector<64x16xf32>
    %36 = arith.addf %32, %35 : vector<64x16xf32>
    %37 = vector.extract_strided_slice %3 {offsets = [18, 0], sizes = [64, 16], strides = [1, 1]} : vector<88x16xf32> to vector<64x16xf32>
    %c128 = arith.constant 128 : index
    %c0_17 = arith.constant 0 : index
    %38 = vector.load %arg2[%c128, %c0_17] : memref<144x16xf32, #tpu.memory_space<vmem>>, vector<16x16xf32>
    %cst_18 = arith.constant dense<0.000000e+00> : vector<64x16xf32>
    %39 = tpu.matmul %37, %38, %cst_18 {dimension_numbers = #tpu.dot_dimension_numbers<[1], [0], [0], [1], [0, 0, 1, 1], [], []>} : vector<64x16xf32>, vector<16x16xf32>, vector<64x16xf32> -> vector<64x16xf32>
    %40 = arith.addf %36, %39 : vector<64x16xf32>
    %c0_19 = arith.constant 0 : index
    %c0_20 = arith.constant 0 : index
    %41 = vector.load %arg3[%c0_19, %c0_20] : memref<1x16xf32, #tpu.memory_space<vmem>>, vector<1x16xf32>
    %42 = vector.broadcast %41 : vector<1x16xf32> to vector<64x16xf32>
    %43 = arith.addf %40, %42 : vector<64x16xf32>
    %44 = math.tanh %43 : vector<64x16xf32>
    %c0_21 = arith.constant 0 : index
    %c0_22 = arith.constant 0 : index
    %45 = vector.load %arg4[%c0_21, %c0_22] : memref<64x16xf32, #tpu.memory_space<vmem>>, vector<64x16xf32>
    tpu.vector_store %arg4[%c0_21, %c0_22], %44 {strides = array<i32>} : memref<64x16xf32, #tpu.memory_space<vmem>>, vector<64x16xf32>,
    return
  }
  func.func @transform_0(%arg0: i32) -> (i32, i32) {
    %c0_i32 = arith.constant 0 : i32
    %c0_i32_0 = arith.constant 0 : i32
    %c0_i32_1 = arith.constant 0 : i32
    return %c0_i32, %c0_i32_0 : i32, i32
  }
  func.func @transform_1(%arg0: i32) -> (i32, i32) {
    %c0_i32 = arith.constant 0 : i32
    %c0_i32_0 = arith.constant 0 : i32
    %c0_i32_1 = arith.constant 0 : i32
    return %c0_i32, %c0_i32_0 : i32, i32
  }
  func.func @transform_2(%arg0: i32) -> (i32, i32) {
    %c0_i32 = arith.constant 0 : i32
    %c0_i32_0 = arith.constant 0 : i32
    %c0_i32_1 = arith.constant 0 : i32
    return %c0_i32, %c0_i32_0 : i32, i32
  }
  func.func @transform_3(%arg0: i32) -> (i32, i32) {
    %c0_i32 = arith.constant 0 : i32
    %c0_i32_0 = arith.constant 0 : i32
    return %arg0, %c0_i32 : i32, i32
  }
}

</mosaic_0001>

<bundles_post_ra>
// kernel: model_tanh_forward.1
= control target key start
LH: loop header
LB: loop body
LE: loop exit
PB: predicated region body
PF: predicated region fallthrough
CT: control target
= control target key end

     0   :  { %s1749_s12 = smov 0   ;;  %s2104_s0 = inlined_call_operand.vmem [shape: f32[152,16], index: 0, kind: input, shape index: {}]   ;;  %s2105_s1 = inlined_call_operand.vmem [shape: f32[144,16], index: 1, kind: input, shape index: {}]   ;;  %s2106_s2 = inlined_call_operand.vmem [shape: f32[1,16], index: 2, kind: input, shape index: {}]   ;;  %s2107_s3 = inlined_call_operand.vmem [shape: f32[128,16], index: 3, kind: output, shape index: {}]  }
   0x1 LB: > { %s1377_s13 = sadd.s32 4294967295, %s1727_s12   ;;  %p1380_p0 = scmp.ge.s32.totalorder %s1727_s12, 1  ;;  %s1727_s12 = sphi %s1749_s12, %s13_s12  }
   0x2   : > { %p127_p1 = scmp.lt.s32.totalorder %s1727_s12, 3 }
   0x4   : > { %p128_p2 = pnand %p1380_p0, %p127_p1 }
   0x5   : > { %s1383_s18 = sshll.u32 (!%p128_p2), %s1377_s13, 6  ;;  %s1381_s4 = sshll.u32 (!%p128_p2), %s1377_s13, 3 }
   0x6   : > { %131 = sbr.rel (%p128_p2) target bundleno = 303 (0x12f), region = 32  ;;  %s1768_s21 = scalar_lea.vmem (!%p128_p2), %s2104_s0, %s1383_s18 }
   0x7   : > { %p147_p3 = scmp.lt.s32.totalorder (!%p128_p2), %s1381_s4, 15 }
   0xb   : > { %v168_v0 = vld [vmem:[%s2105_s1 + $0x18] sm:$0xff]  ;;  %v167_v1 = vld [vmem:[%s2105_s1 + $0x10] sm:$0xff]  ;;  %v166_v2 = vld [vmem:[%s2105_s1 + $0x8] sm:$0xff]  ;;  %vm178_vm0 = vcmask 1046528   ;;  %vm196_vm1 = vcmask 130048   ;;  %vm441_vm2 = vcmask 1045504  }
   0xc   : > { %1693 = vmatprep.subr.mxu1 %v168_v0  ;;  %1549 = vmatprep.subr.mxu0 %v168_v0  ;;  %v440_v3 = vld [vmem:[%s2105_s1 + $0x28] sm:$0xff]  ;;  %v1777_v4 = vld [vmem:[%s1768_s21] sm:$0xff]  ;;  %v1792_v11 = vld [vmem:[%s1768_s21 + $0x10] sm:$0xff]  ;;  %s2109_s4 = smov (!%p147_p3, %s1381_s4), 15 }
   0xd   : > { %1695 = vmatpush3.msra.mxu1 %v168_v0  ;;  %1550 = vmatpush3.msra.mxu0 %v168_v0  ;;  %v1780_v5 = vld [vmem:[%s1768_s21 + $0x8] sm:$0xff]  ;;  %v1783_v6 = vld [vmem:[%s1768_s21 + $0x20] sm:$0xff]  ;;  %v179_v7 = vrot.slane %v1777_v4, 1  ;;  %v1795_v12 = vld [vmem:[%s1768_s21 + $0x30] sm:$0xff]  ;;  %v182_v14 = vrot.slane %v1792_v11, 1  ;;  %v442_v29 = vrot.slane %v1777_v4, 2 }
   0xe   : > { %1694 = vmatprep.subr.mxu1 %v167_v1  ;;  %1551 = vmatprep.subr.mxu0 %v167_v1  ;;  %v180_v8 = vrot.slane %v1780_v5, 1  ;;  %v1788_v9 = vld [vmem:[%s1768_s21 + $0x28] sm:$0xff]  ;;  %v186_v10 = vrot.slane %v1783_v6, 1  ;;  %v190_v15 = vrot.slane %v1795_v12, 1  ;;  %v1801_v16 = vld [vmem:[%s1768_s21 + $0x18] sm:$0xff]  ;;  %v1807_v18 = vld [vmem:[%s1768_s21 + $0x40] sm:$0xff] }
   0xf   : > { %1696 = vmatpush3.msra.mxu1 %v167_v1  ;;  %1552 = vmatpush3.msra.mxu0 %v167_v1  ;;  %v188_v13 = vrot.slane %v1788_v9, 1  ;;  %v1804_v17 = vld [vmem:[%s1768_s21 + $0x38] sm:$0xff]  ;;  %v184_v20 = vrot.slane %v1801_v16, 1  ;;  %v194_v22 = vrot.slane %v1807_v18, 1  ;;  %v165_v28 = vld [vmem:[%s2105_s1] sm:$0xff]  ;;  %v443_v30 = vrot.slane %v1780_v5, 2 }
  0x10   : > { %v181_v19 = vsel %vm178_vm0, %v179_v7, %v180_v8  ;;  %1565 = vmatprep.subr.mxu1 %v166_v2  ;;  %1581 = vmatprep.subr.mxu0 %v440_v3  ;;  %v192_v21 = vrot.slane %v1804_v17, 1  ;;  %v1818_v24 = vsel %vm178_vm0, %v180_v8, %v182_v14  ;;  %v445_v32 = vrot.slane %v1792_v11, 2  ;;  %v439_v34 = vld [vmem:[%s2105_s1 + $0x20] sm:$0xff]  ;;  %v1855_v35 = vld [vmem:[%s1768_s21 + $0x48] sm:$0xff]  ;;  %v1858_v36 = vld [vmem:[%s1768_s21 + $0x50] sm:$0xff]  ;;  %s1382_s13 = sshll.u32 %s2109_s4, 3 }
  0x11   : > { %1553 = vmatprep.mubr.msk.f32.mxu0 %vm196_vm1, %v181_v19  ;;  %v1815_v23 = vsel %vm178_vm0, %v186_v10, %v188_v13  ;;  %v1821_v25 = vsel %vm178_vm0, %v188_v13, %v190_v15  ;;  %v1828_v26 = vsel %vm178_vm0, %v182_v14, %v184_v20  ;;  %v1841_v31 = vsel %vm178_vm0, %v184_v20, %v186_v10  ;;  %v589_v38 = vld [vmem:[%s2105_s1 + $0x38] sm:$0xff]  ;;  %v706_v41 = vld [vmem:[%s2105_s1 + $0x48] sm:$0xff]  ;;  %v588_v48 = vld [vmem:[%s2105_s1 + $0x30] sm:$0xff]  ;;  %s150_s7 = scalar_lea.vmem %s2107_s3, %s1382_s13 }
  0x12   : > { %1559 = vmatprep.mubr.msk.f32.mxu1 %vm196_vm1, %v1815_v23  ;;  %1554 = vmatmul.mubr.msk.f32.vlgmr.msra.gmra.mxu0 %vm196_vm1, %v1818_v24  ;;  %v1831_v27 = vsel %vm178_vm0, %v190_v15, %v192_v21  ;;  %v1849_v33 = vsel %vm178_vm0, %v192_v21, %v194_v22  ;;  %v444_v37 = vsel %vm441_vm2, %v442_v29, %v443_v30  ;;  %v447_v39 = vrot.slane %v1801_v16, 2  ;;  %v705_v53 = vld [vmem:[%s2105_s1 + $0x40] sm:$0xff]  ;;  %v826_v54 = vld [vmem:[%s2105_s1 + $0x58] sm:$0xff]  ;;  %v945_v57 = vld [vmem:[%s2105_s1 + $0x68] sm:$0xff] }
  0x13   : > { %1560 = vmatmul.mubr.msk.f32.vlgmr.msra.gmra.mxu1 %vm196_vm1, %v1821_v25  ;;  %1582 = vmatpush3.msra.mxu0 %v440_v3  ;;  %v1872_v40 = vsel %vm441_vm2, %v443_v30, %v445_v32  ;;  %v449_v42 = vrot.slane %v1783_v6, 2  ;;  %v708_v43 = vrot.slane %v1855_v35, 1  ;;  %v1064_v44 = vrot.slane %v1858_v36, 1  ;;  %v825_v60 = vld [vmem:[%s2105_s1 + $0x50] sm:$0xff]  ;;  %v944_v61 = vld [vmem:[%s2105_s1 + $0x60] sm:$0xff]  ;;  %v1062_v62 = vld [vmem:[%s2105_s1 + $0x78] sm:$0xff] }
  0x14   : > { %1566 = vmatpush3.msra.mxu1 %v166_v2  ;;  %1556 = vmatprep.mubr.msk.f32.mxu0 %vm196_vm1, %v1828_v26  ;;  %v451_v45 = vrot.slane %v1788_v9, 2  ;;  %v1892_v47 = vsel %vm441_vm2, %v445_v32, %v447_v39  ;;  %v453_v50 = vrot.slane %v1795_v12, 2  ;;  %v455_v52 = vrot.slane %v1804_v17, 2  ;;  %v1182_v63 = vld [vmem:[%s2105_s1 + $0x88] sm:$0xff]  ;;  %v1061_v1 = vld [vmem:[%s2105_s1 + $0x70] sm:$0xff]  ;;  %v1181_v2 = vld [vmem:[%s2105_s1 + $0x80] sm:$0xff] }
  0x15   : > { %1562 = vmatprep.mubr.msk.f32.mxu1 %vm196_vm1, %v1831_v27  ;;  %1567 = vmatprep.subr.mxu1 %v165_v28  ;;  %v1887_v46 = vsel %vm178_vm0, %v708_v43, %v1064_v44  ;;  %v1900_v49 = vsel %vm441_vm2, %v447_v39, %v449_v42  ;;  %v457_v56 = vrot.slane %v1807_v18, 2  ;;  %v709_v0 = vsel %vm178_vm0, %v194_v22, %v708_v43 }
  0x16   : > { %1557 = vmatmul.mubr.msk.f32.gmra.mxu0 %vm196_vm1, %v1841_v31  ;;  %1568 = vmatpush3.msra.mxu1 %v165_v28  ;;  %v1906_v51 = vsel %vm441_vm2, %v449_v42, %v451_v45  ;;  %v1924_v55 = vsel %vm441_vm2, %v451_v45, %v453_v50  ;;  %v1933_v58 = vsel %vm441_vm2, %v453_v50, %v455_v52  ;;  %v827_v3 = vrot.slane %v1855_v35, 2 }
  0x17   : > { %1563 = vmatmul.mubr.msk.f32.gmra.mxu1 %vm196_vm1, %v1849_v33  ;;  %1583 = vmatprep.subr.mxu0 %v439_v34  ;;  %v1944_v59 = vsel %vm441_vm2, %v455_v52, %v457_v56 }
  0x18   : > { %1584 = vmatpush3.msra.mxu0 %v439_v34  ;;  %1569 = vmatprep.mubr.msk.f32.mxu1 %vm196_vm1, %v1777_v4  ;;  %v828_v4 = vsel %vm441_vm2, %v457_v56, %v827_v3 }
  0x19   : > { %1585 = vmatprep.mubr.msk.f32.mxu0 %vm196_vm1, %v444_v37  ;;  %1597 = vmatprep.subr.mxu1 %v589_v38 }
  0x1a   : > { %1586 = vmatmul.mubr.msk.f32.vlgmr.msra.gmra.mxu0 %vm196_vm1, %v1872_v40  ;;  %1613 = vmatprep.subr.mxu0 %v706_v41 }
  0x1b   : > { %1570 = vmatmul.mubr.msk.f32.vlgmr.msra.gmra.mxu1 %vm196_vm1, %v1780_v5  ;;  %1614 = vmatpush3.msra.mxu0 %v706_v41 }
  0x1c   : > { %1598 = vmatpush3.msra.mxu1 %v589_v38  ;;  %1572 = vmatprep.mubr.msk.f32.mxu1 %vm196_vm1, %v1792_v11 }
  0x1d   : > { %1588 = vmatprep.mubr.msk.f32.mxu0 %vm196_vm1, %v1892_v47  ;;  %1599 = vmatprep.subr.mxu1 %v588_v48 }
  0x1e   : > { %1589 = vmatmul.mubr.msk.f32.gmra.mxu0 %vm196_vm1, %v1900_v49  ;;  %1600 = vmatpush3.msra.mxu1 %v588_v48 }
  0x1f   : > { %1573 = vmatmul.mubr.msk.f32.gmra.mxu1 %vm196_vm1, %v1801_v16  ;;  %1591 = vmatprep.mubr.msk.f32.mxu0 %vm196_vm1, %v1906_v51 }
  0x20   : > { %1575 = vmatprep.mubr.msk.f32.mxu1 %vm196_vm1, %v1783_v6  ;;  %1615 = vmatprep.subr.mxu0 %v705_v53 }
  0x21   : > { %1616 = vmatpush3.msra.mxu0 %v705_v53  ;;  %1629 = vmatprep.subr.mxu1 %v826_v54 }
  0x22   : > { %1592 = vmatmul.mubr.msk.f32.gmra.mxu0 %vm196_vm1, %v1924_v55  ;;  %1645 = vmatprep.subr.mxu0 %v945_v57 }
  0x23   : > { %1576 = vmatmul.mubr.msk.f32.gmra.mxu1 %vm196_vm1, %v1788_v9  ;;  %1594 = vmatprep.mubr.msk.f32.mxu0 %vm196_vm1, %v1933_v58 }
  0x24   : > { %1578 = vmatprep.mubr.msk.f32.mxu1 %vm196_vm1, %v1795_v12 }
  0x26   : > { %1595 = vmatmul.mubr.msk.f32.gmra.mxu0 %vm196_vm1, %v1944_v59 }
  0x27   : > { %1579 = vmatmul.mubr.msk.f32.gmra.mxu1 %vm196_vm1, %v1804_v17  ;;  %1617 = vmatprep.mubr.msk.f32.mxu0 %vm196_vm1, %v1818_v24 }
  0x28   : > { %1601 = vmatprep.mubr.msk.f32.mxu1 %vm196_vm1, %v1780_v5  ;;  %v1183_v5 = vrot.slane %v1858_v36, 2 }
  0x2a   : > { %1618 = vmatmul.mubr.msk.f32.vlgmr.msra.gmra.mxu0 %vm196_vm1, %v1828_v26 }
  0x2b   : > { %1602 = vmatmul.mubr.msk.f32.vlgmr.msra.gmra.mxu1 %vm196_vm1, %v1792_v11  ;;  %1646 = vmatpush3.msra.mxu0 %v945_v57 }
  0x2c   : > { %1630 = vmatpush3.msra.mxu1 %v826_v54  ;;  %1604 = vmatprep.mubr.msk.f32.mxu1 %vm196_vm1, %v1801_v16 }
  0x2d   : > { %1620 = vmatprep.mubr.msk.f32.mxu0 %vm196_vm1, %v1841_v31  ;;  %1631 = vmatprep.subr.mxu1 %v825_v60 }
  0x2e   : > { %1621 = vmatmul.mubr.msk.f32.gmra.mxu0 %vm196_vm1, %v1815_v23  ;;  %1632 = vmatpush3.msra.mxu1 %v825_v60 }
  0x2f   : > { %1605 = vmatmul.mubr.msk.f32.gmra.mxu1 %vm196_vm1, %v1783_v6  ;;  %1623 = vmatprep.mubr.msk.f32.mxu0 %vm196_vm1, %v1821_v25 }
  0x30   : > { %1607 = vmatprep.mubr.msk.f32.mxu1 %vm196_vm1, %v1788_v9  ;;  %1647 = vmatprep.subr.mxu0 %v944_v61 }
  0x31   : > { %1648 = vmatpush3.msra.mxu0 %v944_v61  ;;  %1661 = vmatprep.subr.mxu1 %v1062_v62 }
  0x32   : > { %1624 = vmatmul.mubr.msk.f32.gmra.mxu0 %vm196_vm1, %v1831_v27  ;;  %1677 = vmatprep.subr.mxu0 %v1182_v63 }
  0x33   : > { %1608 = vmatmul.mubr.msk.f32.gmra.mxu1 %vm196_vm1, %v1795_v12  ;;  %1626 = vmatprep.mubr.msk.f32.mxu0 %vm196_vm1, %v1849_v33 }
  0x34   : > { %1610 = vmatprep.mubr.msk.f32.mxu1 %vm196_vm1, %v1804_v17 }
  0x36   : > { %1627 = vmatmul.mubr.msk.f32.gmra.mxu0 %vm196_vm1, %v709_v0 }
  0x37   : > { %1611 = vmatmul.mubr.msk.f32.gmra.mxu1 %vm196_vm1, %v1807_v18  ;;  %1649 = vmatprep.mubr.msk.f32.mxu0 %vm196_vm1, %v1792_v11 }
  0x38   : > { %1633 = vmatprep.mubr.msk.f32.mxu1 %vm196_vm1, %v1872_v40 }
  0x3a   : > { %1650 = vmatmul.mubr.msk.f32.vlgmr.msra.gmra.mxu0 %vm196_vm1, %v1801_v16 }
  0x3b   : > { %1634 = vmatmul.mubr.msk.f32.vlgmr.msra.gmra.mxu1 %vm196_vm1, %v1892_v47  ;;  %1678 = vmatpush3.msra.mxu0 %v1182_v63 }
  0x3c   : > { %1662 = vmatpush3.msra.mxu1 %v1062_v62  ;;  %1636 = vmatprep.mubr.msk.f32.mxu1 %vm196_vm1, %v1900_v49 }
  0x3d   : > { %1652 = vmatprep.mubr.msk.f32.mxu0 %vm196_vm1, %v1783_v6  ;;  %1663 = vmatprep.subr.mxu1 %v1061_v1  ;;  %v1184_v6 = vsel %vm441_vm2, %v827_v3, %v1183_v5 }
  0x3e   : > { %1653 = vmatmul.mubr.msk.f32.gmra.mxu0 %vm196_vm1, %v1788_v9  ;;  %1664 = vmatpush3.msra.mxu1 %v1061_v1 }
  0x3f   : > { %1637 = vmatmul.mubr.msk.f32.gmra.mxu1 %vm196_vm1, %v1906_v51  ;;  %1655 = vmatprep.mubr.msk.f32.mxu0 %vm196_vm1, %v1795_v12 }
  0x40   : > { %1639 = vmatprep.mubr.msk.f32.mxu1 %vm196_vm1, %v1924_v55  ;;  %1679 = vmatprep.subr.mxu0 %v1181_v2 }
  0x41   : > { %1680 = vmatpush3.msra.mxu0 %v1181_v2 }
  0x42   : > { %1656 = vmatmul.mubr.msk.f32.gmra.mxu0 %vm196_vm1, %v1804_v17 }
  0x43   : > { %1640 = vmatmul.mubr.msk.f32.gmra.mxu1 %vm196_vm1, %v1933_v58  ;;  %1658 = vmatprep.mubr.msk.f32.mxu0 %vm196_vm1, %v1807_v18 }
  0x44   : > { %1642 = vmatprep.mubr.msk.f32.mxu1 %vm196_vm1, %v1944_v59 }
  0x46   : > { %1659 = vmatmul.mubr.msk.f32.gmra.mxu0 %vm196_vm1, %v1855_v35 }
  0x47   : > { %1643 = vmatmul.mubr.msk.f32.gmra.mxu1 %vm196_vm1, %v828_v4  ;;  %1681 = vmatprep.mubr.msk.f32.mxu0 %vm196_vm1, %v1892_v47 }
  0x48   : > { %1665 = vmatprep.mubr.msk.f32.mxu1 %vm196_vm1, %v1828_v26 }
  0x4a   : > { %1682 = vmatmul.mubr.msk.f32.vlgmr.msra.gmra.mxu0 %vm196_vm1, %v1900_v49 }
  0x4b   : > { %1666 = vmatmul.mubr.msk.f32.vlgmr.msra.gmra.mxu1 %vm196_vm1, %v1841_v31  ;;  %1684 = vmatprep.mubr.msk.f32.mxu0 %vm196_vm1, %v1906_v51 }
  0x4c   : > { %1668 = vmatprep.mubr.msk.f32.mxu1 %vm196_vm1, %v1815_v23 }
  0x4e   : > { %1685 = vmatmul.mubr.msk.f32.gmra.mxu0 %vm196_vm1, %v1924_v55 }
  0x4f   : > { %1669 = vmatmul.mubr.msk.f32.gmra.mxu1 %vm196_vm1, %v1821_v25  ;;  %1687 = vmatprep.mubr.msk.f32.mxu0 %vm196_vm1, %v1933_v58 }
  0x50   : > { %1671 = vmatprep.mubr.msk.f32.mxu1 %vm196_vm1, %v1831_v27 }
  0x52   : > { %1688 = vmatmul.mubr.msk.f32.gmra.mxu0 %vm196_vm1, %v1944_v59 }
  0x53   : > { %1672 = vmatmul.mubr.msk.f32.gmra.mxu1 %vm196_vm1, %v1849_v33  ;;  %1690 = vmatprep.mubr.msk.f32.mxu0 %vm196_vm1, %v828_v4 }
  0x54   : > { %1674 = vmatprep.mubr.msk.f32.mxu1 %vm196_vm1, %v709_v0 }
  0x56   : > { %1691 = vmatmul.mubr.msk.f32.gmra.mxu0 %vm196_vm1, %v1184_v6 }
  0x57   : > { %1675 = vmatmul.mubr.msk.f32.gmra.mxu1 %vm196_vm1, %v1887_v46 }
  0xd2   : > { %v1555_v7 = vpop.f32.mrf.mxu0 }
  0xd3   : > { %v1561_v8 = vpop.f32.mrf.mxu1 }
  0xd4   : > { %v279_v9 = vpop.f32.mrf.mxu0 }
  0xd5   : > { %v299_v10 = vpop.f32.mrf.mxu1 }
  0xd6   : > { %v1558_v11 = vpop.f32.mrf.mxu0 }
  0xd7   : > { %v1564_v12 = vpop.f32.mrf.mxu1 }
  0xd8   : > { %v289_v13 = vpop.f32.mrf.mxu0 }
  0xd9   : > { %v2072_v14 = vpop.f32.mrf.mxu1 }
  0xda   : > { %v1587_v15 = vpop.f32.mrf.mxu0 }
  0xdb   : > { %v1571_v16 = vpop.f32.mrf.mxu1 }
  0xdc   : > { %v541_v17 = vpop.f32.mrf.mxu0  ;;  %v406_v47 = vadd.f32 %v1571_v16, %v1555_v7 }
  0xdd   : > { %v400_v18 = vpop.f32.mrf.mxu1 }
  0xde   : > { %v1590_v19 = vpop.f32.mrf.mxu0  ;;  %v401_v50 = vadd.f32 %v400_v18, %v279_v9  ;;  %v581_v53 = vadd.f32 %v1587_v15, %v406_v47 }
  0xdf   : > { %v1574_v20 = vpop.f32.mrf.mxu1 }
  0xe0   : > { %v551_v21 = vpop.f32.mrf.mxu0  ;;  %v416_v54 = vadd.f32 %v1574_v20, %v1558_v11  ;;  %v580_v57 = vadd.f32 %v541_v17, %v401_v50 }
  0xe1   : > { %v410_v22 = vpop.f32.mrf.mxu1 }
  0xe2   : > { %v1593_v23 = vpop.f32.mrf.mxu0  ;;  %v411_v58 = vadd.f32 %v410_v22, %v289_v13  ;;  %v583_v63 = vadd.f32 %v1590_v19, %v416_v54 }
  0xe3   : > { %v1577_v24 = vpop.f32.mrf.mxu1 }
  0xe4   : > { %v561_v25 = vpop.f32.mrf.mxu0  ;;  %v426_v61 = vadd.f32 %v1577_v24, %v1561_v8  ;;  %v582_v4 = vadd.f32 %v551_v21, %v411_v58 }
  0xe5   : > { %v420_v26 = vpop.f32.mrf.mxu1 }
  0xe6   : > { %v1596_v27 = vpop.f32.mrf.mxu0  ;;  %v421_v2 = vadd.f32 %v420_v26, %v299_v10  ;;  %v585_v9 = vadd.f32 %v1593_v23, %v426_v61 }
  0xe7   : > { %v1580_v28 = vpop.f32.mrf.mxu1 }
  0xe8   : > { %v2074_v29 = vpop.f32.mrf.mxu0  ;;  %v436_v15 = vadd.f32 %v1580_v28, %v1564_v12  ;;  %v584_v20 = vadd.f32 %v561_v25, %v421_v2 }
  0xe9   : > { %v430_v30 = vpop.f32.mrf.mxu1 }
  0xea   : > { %v1619_v31 = vpop.f32.mrf.mxu0  ;;  %v431_v8 = vadd.f32 %v430_v30, %v2072_v14  ;;  %v587_v26 = vadd.f32 %v1596_v27, %v436_v15  ;;  %v1456_v27 = vld [vmem:[%s2106_s2] ss:$0 sm:$0xff] }
  0xeb   : > { %v1603_v32 = vpop.f32.mrf.mxu1 }
  0xec   : > { %v778_v33 = vpop.f32.mrf.mxu0  ;;  %v698_v59 = vadd.f32 %v1603_v32, %v581_v53  ;;  %v586_v28 = vadd.f32 %v2074_v29, %v431_v8 }
  0xed   : > { %v658_v34 = vpop.f32.mrf.mxu1 }
  0xee   : > { %v1622_v35 = vpop.f32.mrf.mxu0  ;;  %v697_v0 = vadd.f32 %v658_v34, %v580_v57  ;;  %v818_v5 = vadd.f32 %v1619_v31, %v698_v59 }
  0xef   : > { %v1606_v36 = vpop.f32.mrf.mxu1 }
  0xf0   : > { %v788_v37 = vpop.f32.mrf.mxu0  ;;  %v700_v6 = vadd.f32 %v1606_v36, %v583_v63  ;;  %v817_v16 = vadd.f32 %v778_v33, %v697_v0 }
  0xf1   : > { %v668_v38 = vpop.f32.mrf.mxu1 }
  0xf2   : > { %v1625_v39 = vpop.f32.mrf.mxu0  ;;  %v699_v18 = vadd.f32 %v668_v38, %v582_v4  ;;  %v820_v24 = vadd.f32 %v1622_v35, %v700_v6 }
  0xf3   : > { %v1609_v40 = vpop.f32.mrf.mxu1 }
  0xf4   : > { %v798_v41 = vpop.f32.mrf.mxu0  ;;  %v702_v22 = vadd.f32 %v1609_v40, %v585_v9  ;;  %v819_v34 = vadd.f32 %v788_v37, %v699_v18 }
  0xf5   : > { %v678_v42 = vpop.f32.mrf.mxu1 }
  0xf6   : > { %v2076_v43 = vpop.f32.mrf.mxu0  ;;  %v701_v21 = vadd.f32 %v678_v42, %v584_v20  ;;  %v822_v33 = vadd.f32 %v1625_v39, %v702_v22 }
  0xf7   : > { %v1612_v44 = vpop.f32.mrf.mxu1 }
  0xf8   : > { %v2078_v45 = vpop.f32.mrf.mxu0  ;;  %v704_v38 = vadd.f32 %v1612_v44, %v587_v26  ;;  %v821_v35 = vadd.f32 %v798_v41, %v701_v21 }
  0xf9   : > { %v688_v46 = vpop.f32.mrf.mxu1 }
  0xfa   : > { %v1651_v48 = vpop.f32.mrf.mxu0  ;;  %v824_v39 = vadd.f32 %v2076_v43, %v704_v38 }
  0xfb   : > { %v1635_v49 = vpop.f32.mrf.mxu1 }
  0xfc   : > { %v1014_v51 = vpop.f32.mrf.mxu0  ;;  %v937_v17 = vadd.f32 %v1635_v49, %v818_v5  ;;  %v703_v49 = vadd.f32 %v688_v46, %v586_v28 }
  0xfd   : > { %v897_v52 = vpop.f32.mrf.mxu1 }
  0xfe   : > { %v1654_v55 = vpop.f32.mrf.mxu0  ;;  %v936_v32 = vadd.f32 %v897_v52, %v817_v16  ;;  %v1054_v36 = vadd.f32 %v1651_v48, %v937_v17  ;;  %v823_v57 = vadd.f32 %v2078_v45, %v703_v49 }
  0xff   : > { %v1638_v56 = vpop.f32.mrf.mxu1 }
 0x100   : > { %v1024_v60 = vpop.f32.mrf.mxu0  ;;  %v939_v23 = vadd.f32 %v1638_v56, %v820_v24  ;;  %v1053_v25 = vadd.f32 %v1014_v51, %v936_v32 }
 0x101   : > { %v907_v62 = vpop.f32.mrf.mxu1 }
 0x102   : > { %v1657_v1 = vpop.f32.mrf.mxu0  ;;  %v938_v14 = vadd.f32 %v907_v62, %v819_v34  ;;  %v1056_v42 = vadd.f32 %v1654_v55, %v939_v23 }
 0x103   : > { %v1641_v3 = vpop.f32.mrf.mxu1 }
 0x104   : > { %v1034_v7 = vpop.f32.mrf.mxu0  ;;  %v941_v50 = vadd.f32 %v1641_v3, %v822_v33  ;;  %v1055_v53 = vadd.f32 %v1024_v60, %v938_v14 }
 0x105   : > { %v917_v11 = vpop.f32.mrf.mxu1 }
 0x106   : > { %v1660_v13 = vpop.f32.mrf.mxu0  ;;  %v940_v44 = vadd.f32 %v917_v11, %v821_v35  ;;  %v1058_v58 = vadd.f32 %v1657_v1, %v941_v50 }
 0x107   : > { %v1644_v19 = vpop.f32.mrf.mxu1 }
 0x108   : > { %v1044_v10 = vpop.f32.mrf.mxu0  ;;  %v943_v59 = vadd.f32 %v1644_v19, %v824_v39  ;;  %v1057_v0 = vadd.f32 %v1034_v7, %v940_v44 }
 0x109   : > { %v927_v31 = vpop.f32.mrf.mxu1 }
 0x10a   : > { %v1683_v12 = vpop.f32.mrf.mxu0  ;;  %v942_v2 = vadd.f32 %v927_v31, %v823_v57  ;;  %v1060_v9 = vadd.f32 %v1660_v13, %v943_v59 }
 0x10b   : > { %v1667_v47 = vpop.f32.mrf.mxu1 }
 0x10c   : > { %v1174_v30 = vadd.f32 %v1667_v47, %v1054_v36  ;;  %v1253_v40 = vpop.f32.mrf.mxu0  ;;  %v1059_v16 = vadd.f32 %v1044_v10, %v942_v2 }
 0x10d   : > { %v1134_v37 = vpop.f32.mrf.mxu1 }
 0x10e   : > { %v1293_v48 = vadd.f32 %v1683_v12, %v1174_v30  ;;  %v1173_v52 = vadd.f32 %v1134_v37, %v1053_v25  ;;  %v1686_v29 = vpop.f32.mrf.mxu0 }
 0x10f   : > { %v1670_v51 = vpop.f32.mrf.mxu1 }
 0x110   : > { %v1308_v54 = vadd.f32 %v1456_v27, %v1293_v48  ;;  %v1292_v41 = vadd.f32 %v1253_v40, %v1173_v52  ;;  %v1176_v46 = vadd.f32 %v1670_v51, %v1056_v42  ;;  %v1263_v56 = vpop.f32.mrf.mxu0 }
 0x111   : > { %v1144_v61 = vpop.f32.mrf.mxu1 }
 0x112   : > { %1705 = vtanh.f32 %v1308_v54  ;;  %v1307_v55 = vadd.f32 %v1456_v27, %v1292_v41  ;;  %v1295_v62 = vadd.f32 %v1686_v29, %v1176_v46  ;;  %v1175_v63 = vadd.f32 %v1144_v61, %v1055_v53  ;;  %v1689_v43 = vpop.f32.mrf.mxu0 }
 0x113   : > { %v1673_v3 = vpop.f32.mrf.mxu1 }
 0x114   : > { %1707 = vtanh.f32 %v1307_v55  ;;  %v1310_v60 = vadd.f32 %v1456_v27, %v1295_v62  ;;  %v1294_v4 = vadd.f32 %v1263_v56, %v1175_v63  ;;  %v1178_v5 = vadd.f32 %v1673_v3, %v1058_v58  ;;  %v1273_v6 = vpop.f32.mrf.mxu0 }
 0x115   : > { %v1154_v15 = vpop.f32.mrf.mxu1 }
 0x116   : > { %1709 = vtanh.f32 %v1310_v60  ;;  %v1309_v45 = vadd.f32 %v1456_v27, %v1294_v4  ;;  %v1297_v1 = vadd.f32 %v1689_v43, %v1178_v5  ;;  %v1177_v11 = vadd.f32 %v1154_v15, %v1057_v0  ;;  %v1692_v17 = vpop.f32.mrf.mxu0 }
 0x117   : > { %v1676_v18 = vpop.f32.mrf.mxu1 }
 0x118   : > { %1711 = vtanh.f32 %v1309_v45  ;;  %v1312_v7 = vadd.f32 %v1456_v27, %v1297_v1  ;;  %v1296_v20 = vadd.f32 %v1273_v6, %v1177_v11  ;;  %v1180_v8 = vadd.f32 %v1676_v18, %v1060_v9  ;;  %v1283_v32 = vpop.f32.mrf.mxu0 }
 0x119   : > { %v1164_v22 = vpop.f32.mrf.mxu1 }
 0x11a   : > { %1713 = vtanh.f32 %v1312_v7  ;;  %v1311_v19 = vadd.f32 %v1456_v27, %v1296_v20  ;;  %v1299_v24 = vadd.f32 %v1692_v17, %v1180_v8  ;;  %v1179_v13 = vadd.f32 %v1164_v22, %v1059_v16 }
 0x11c   : > { %1715 = vtanh.f32 %v1311_v19  ;;  %v1314_v26 = vadd.f32 %v1456_v27, %v1299_v24  ;;  %v1298_v21 = vadd.f32 %v1283_v32, %v1179_v13 }
 0x11e   : > { %1717 = vtanh.f32 %v1314_v26  ;;  %v1313_v10 = vadd.f32 %v1456_v27, %v1298_v21 }
 0x11f   : > { %v1706_v31 = vpop.eup %1705 }
 0x120   : > { %1324 = vst.msk [vmem:[%s150_s7 + $0x8] sm:$0xff] %vm196_vm1, %v1706_v31  ;;  %1719 = vtanh.f32 %v1313_v10 }
 0x121   : > { %v1708_v34 = vpop.eup %1707 }
 0x122   : > { %1323 = vst.msk [vmem:[%s150_s7] sm:$0xff] %vm196_vm1, %v1708_v34 }
 0x123   : > { %v1710_v36 = vpop.eup %1709 }
 0x124   : > { %1326 = vst.msk [vmem:[%s150_s7 + $0x18] sm:$0xff] %vm196_vm1, %v1710_v36 }
 0x125   : > { %v1712_v23 = vpop.eup %1711 }
 0x126   : > { %1325 = vst.msk [vmem:[%s150_s7 + $0x10] sm:$0xff] %vm196_vm1, %v1712_v23 }
 0x127   : > { %v1714_v12 = vpop.eup %1713 }
 0x128   : > { %1328 = vst.msk [vmem:[%s150_s7 + $0x28] sm:$0xff] %vm196_vm1, %v1714_v12 }
 0x129   : > { %v1716_v28 = vpop.eup %1715 }
 0x12a   : > { %1327 = vst.msk [vmem:[%s150_s7 + $0x20] sm:$0xff] %vm196_vm1, %v1716_v28 }
 0x12b   : > { %v1718_v33 = vpop.eup %1717 }
 0x12c   : > { %1330 = vst.msk [vmem:[%s150_s7 + $0x38] sm:$0xff] %vm196_vm1, %v1718_v33 }
 0x12d   : > { %v1720_v38 = vpop.eup %1719 }
 0x12e   : > { %1329 = vst.msk [vmem:[%s150_s7 + $0x30] sm:$0xff] %vm196_vm1, %v1720_v38 }
 0x12f PF: > { %s13_s12 = sadd.s32 1, %s1727_s12  }
 0x130   : > { %p10_p4 = scmp.ge.s32.totalorder %s13_s12, 4  }
 0x132   :  { %12 = sbr.rel (!%p10_p4) target bundleno = 1 (0x1), region = 60 }

</bundles_post_ra>
